<compile_context>
chip_gen: v7x
topology: tpu7x:2x2x1
jax: 0.10.0
libtpu: 0.0.40
codegen_flags: <defaults>
</compile_context>

<pallas_src>
import functools

import jax
import jax.numpy as jnp
from jax.experimental import pallas as pl
from jax.experimental.pallas import tpu as pltpu


def _cdiv(a: int, b: int) -> int:
    return -(-a // b)


def _round_up(x: int, m: int) -> int:
    return ((x + m - 1) // m) * m


def _num_tensorcores_per_chip() -> int:
    """2 on v7x-class chips (2 TensorCores/chip), else 1 (v5e / v6e)."""
    try:
        kind = str(getattr(jax.devices()[0], "device_kind", "")).lower()
    except Exception:
        return 1
    if "v7" in kind or "tpu7" in kind or "7x" in kind:
        return 2
    return 1


def _rel_loss_kernel(pred_ref, gt_ref, out_ref, loss_acc, npos_acc,
                     *, tm, lanes, m_rows, ragged):
    j = pl.program_id(1)

    @pl.when(j == 0)
    def _init():
        loss_acc[...] = jnp.zeros_like(loss_acc)
        npos_acc[...] = jnp.zeros_like(npos_acc)

    pred = pred_ref[...].astype(jnp.float32)
    gt = gt_ref[...].astype(jnp.float32)

    if ragged:
        # Mask rows at/after m_rows (garbage from the partial / clamped boundary
        # block) to (pred=0, gt=0): log(1)*0 == 0 and is_pos == False, so they
        # contribute exactly nothing to either sum.  Static flag: the aligned
        # case pays no masking cost at all.
        row0 = (pl.program_id(0) * pl.num_programs(1) + j) * tm
        rows = row0 + jax.lax.broadcasted_iota(jnp.int32, (tm, lanes), 0)
        valid = rows < m_rows
        pred = jnp.where(valid, pred, 0.0)
        gt = jnp.where(valid, gt, 0.0)

    is_pos = gt == 1.0
    one_m_pred = 1.0 - pred
    one_m_gt = 1.0 - gt
    w2 = one_m_gt * one_m_gt
    w4 = w2 * w2                      # (1 - gt)^4 via two squarings (pure VALU)

    # Positives and negatives partition the tile, so a single log per element
    # with a merged select-weight replaces the two logs (halves EUP pressure).
    log_arg = jnp.where(is_pos, pred, one_m_pred)
    weight = jnp.where(is_pos, one_m_pred * one_m_pred, pred * pred * w4)
    contrib = jnp.log(log_arg) * weight

    # Fold the (tm, L) tile down to one vreg row (8, L) with pure VALU adds and
    # accumulate into the small resident scratch: no (tm, L) accumulator
    # vld/vst round trip per step, only ~32 KiB of accumulator VMEM.
    k = tm // 8
    loss_acc[...] += jnp.sum(contrib.reshape(k, 8, lanes), axis=0)
    npos_acc[...] += jnp.sum(is_pos.astype(jnp.float32).reshape(k, 8, lanes),
                             axis=0)

    @pl.when(j == pl.num_programs(1) - 1)
    def _finalize():
        # Single cross-lane (XLU) reduce + SMEM scalar writeback per split.
        out_ref[0, 0] = jnp.sum(loss_acc[...])
        out_ref[0, 1] = jnp.sum(npos_acc[...])


def rel_loss(pred, gt, *, lanes=512, max_tile_elems=512 * 1024,
             num_core_splits=None):
    """Pallas implementation of RelLoss.forward(pred, gt) -> scalar loss."""
    assert pred.shape == gt.shape, (pred.shape, gt.shape)
    p = pred.reshape(-1)
    g = gt.reshape(-1)
    total = int(p.shape[0])
    if total == 0:
        return jnp.float32(0.0)

    if num_core_splits is None:
        num_core_splits = _num_tensorcores_per_chip()

    # Lane width: prefer one that divides `total` exactly so the (m_rows, L)
    # view is a free reshape (zero extra HBM traffic).  Only totals that are
    # not a multiple of 128 fall back to a zero-pad (one unavoidable copy);
    # pred=0 / gt=0 padding contributes exactly 0 to both sums.
    L = None
    for cand in (lanes, 256, 128):
        if cand >= 128 and cand % 128 == 0 and total % cand == 0:
            L = cand
            break
    if L is None:
        L = max(128, _round_up(lanes, 128))
        padded = _round_up(total, L)
        p = jnp.pad(p, (0, padded - total))
        g = jnp.pad(g, (0, padded - total))
        total = padded
    m_rows = total // L
    p2 = p.reshape(m_rows, L)
    g2 = g.reshape(m_rows, L)

    # Row tile: ~max_tile_elems per (tm, L) input tile (default 2 MiB of f32),
    # multiple of 8 sublanes.  2 inputs x 2 pipeline buffers x 2 MiB = 8 MiB of
    # VMEM + 32 KiB accumulators: under the scoped-VMEM defaults everywhere.
    tm = max(8, (max_tile_elems // L) // 8 * 8)
    tm = min(tm, _round_up(m_rows, 8))

    splits = max(1, min(int(num_core_splits), _cdiv(m_rows, tm)))
    nsteps = _cdiv(_cdiv(m_rows, splits), tm)
    covered = splits * nsteps * tm
    ragged = covered != m_rows
    last_block = (m_rows - 1) // tm   # last row-block holding any valid rows

    if ragged:
        def in_map(i, j):
            # Clamp nominally out-of-range blocks onto the last valid block;
            # the kernel masks them by global row index so they contribute 0.
            return (jnp.minimum(i * nsteps + j, last_block), 0)
    else:
        def in_map(i, j):
            return (i * nsteps + j, 0)

    kernel = functools.partial(_rel_loss_kernel, tm=tm, lanes=L,
                               m_rows=m_rows, ragged=ragged)

    # TODO(synk): on v7x, confirm from a trace that the leading "parallel" axis
    # actually shards across both TensorCores; if it serializes, switch that
    # axis to pltpu.CORE_PARALLEL (or drive it via pl.core_map).
    partials = pl.pallas_call(
        kernel,
        out_shape=jax.ShapeDtypeStruct((splits, 2), jnp.float32),
        grid_spec=pltpu.PrefetchScalarGridSpec(
            num_scalar_prefetch=0,
            grid=(splits, nsteps),
            in_specs=[
                pl.BlockSpec((tm, L), in_map),
                pl.BlockSpec((tm, L), in_map),
            ],
            out_specs=pl.BlockSpec((1, 2), lambda i, j: (i, 0),
                                   memory_space=pltpu.SMEM),
            scratch_shapes=[
                pltpu.VMEM((8, L), jnp.float32),
                pltpu.VMEM((8, L), jnp.float32),
            ],
        ),
        compiler_params=pltpu.CompilerParams(
            dimension_semantics=("parallel", "arbitrary"),
        ),
    )(p2, g2)

    loss_sum = jnp.sum(partials[:, 0])
    num_pos = jnp.sum(partials[:, 1])
    # pos_loss == 0 whenever num_pos == 0, so one expression matches both
    # branches of the reference forward():
    #   num_pos == 0: loss = -neg_loss ; else: loss = -(pos+neg)/num_pos
    return -loss_sum / jnp.maximum(num_pos, 1.0)


def rel_loss_ref(pred, gt):
    """Pure-JAX reference mirroring the PyTorch forward."""
    p = pred.reshape(-1, pred.shape[-1]).astype(jnp.float32)
    g = gt.reshape(-1, gt.shape[-1]).astype(jnp.float32)
    pos_inds = (g == 1.0).astype(jnp.float32)
    neg_inds = (g < 1.0).astype(jnp.float32)
    neg_weights = jnp.power(1.0 - g, 4)
    pos_loss = jnp.sum(jnp.log(p) * jnp.power(1.0 - p, 2) * pos_inds)
    neg_loss = jnp.sum(jnp.log(1.0 - p) * jnp.power(p, 2) * neg_weights * neg_inds)
    num_pos = jnp.sum(pos_inds)
    safe_den = jnp.where(num_pos == 0.0, 1.0, num_pos)
    return jnp.where(num_pos == 0.0, -neg_loss, -(pos_loss + neg_loss) / safe_den)


def _make_inputs(key, shape, pos_frac=0.15):
    k1, k2, k3 = jax.random.split(key, 3)
    # pred: probabilities in (0, 1) (module applies log(pred)/log(1-pred) directly)
    pred = jax.nn.sigmoid(jax.random.normal(k1, shape, dtype=jnp.float32))
    # gt: soft targets in [0, 0.9) with some exact-1.0 positives
    soft = jax.random.uniform(k2, shape, dtype=jnp.float32) * 0.9
    is_pos = jax.random.uniform(k3, shape) < pos_frac
    gt = jnp.where(is_pos, 1.0, soft).astype(jnp.float32)
    return pred, gt, soft


if __name__ == "__main__":
    key = jax.random.PRNGKey(0)
    keys = jax.random.split(key, 4)

    def check(out, ref, name):
        out = jax.block_until_ready(out)
        ref = jax.block_until_ready(ref)
        assert jnp.allclose(out, ref, rtol=1e-4, atol=1e-6), (name, out, ref)

    # 1) small (batch=2, seq=8, classes=32) = 512 elems: one partial row tile,
    #    exercises in-kernel row masking + num_pos > 0 branch.
    pred, gt, soft = _make_inputs(keys[0], (2, 8, 32))
    check(rel_loss(pred, gt), rel_loss_ref(pred, gt), "small")

    # 2) num_pos == 0 branch (no exact-1.0 targets).
    check(rel_loss(pred, soft), rel_loss_ref(pred, soft), "no_pos")

    # 3) multi-step accumulation with ragged row count (small tiles forced).
    pred3, gt3, _ = _make_inputs(keys[1], (2, 33, 256))
    check(rel_loss(pred3, gt3, max_tile_elems=8 * 512),
          rel_loss_ref(pred3, gt3), "ragged_multistep")

    # 4) aligned multi-step with an explicit 2-way core split (serial but
    #    correct on single-TC chips).
    pred4, gt4, _ = _make_inputs(keys[2], (2, 32, 256))
    check(rel_loss(pred4, gt4, max_tile_elems=8 * 512, num_core_splits=2),
          rel_loss_ref(pred4, gt4), "split2")

    # 5) total not a multiple of 128 -> zero-pad fallback path.
    pred5, gt5, _ = _make_inputs(keys[3], (2, 7, 33))
    check(rel_loss(pred5, gt5), rel_loss_ref(pred5, gt5), "pad_fallback")

    print("KERNEL_OK")
</pallas_src>

<mosaic_0001>
module attributes {stable_mosaic.version = 11 : i64} {
  func.func @_rel_loss_kernel(%arg0: i32, %arg1: i32, %arg2: memref<8x512xf32, #tpu.memory_space<vmem>>, %arg3: memref<8x512xf32, #tpu.memory_space<vmem>>, %arg4: memref<1x2xf32, #tpu.memory_space<smem>>, %arg5: memref<8x512xf32, #tpu.memory_space<vmem>>, %arg6: memref<8x512xf32, #tpu.memory_space<vmem>>) attributes {dimension_semantics = [#tpu.dimension_semantics<parallel>, #tpu.dimension_semantics<arbitrary>], iteration_bounds = array<i64: 1, 1>, scalar_prefetch = 0 : i64, scratch_operands = 2 : i64, tpu.core_type = #tpu.core_type<tc>, window_params = [{transform_indices = @transform_0, window_bounds = array<i64: 8, 512>}, {transform_indices = @transform_1, window_bounds = array<i64: 8, 512>}, {transform_indices = @transform_2, window_bounds = array<i64: 1, 2>}]} {
    %c0_i32 = arith.constant 0 : i32
    %0 = arith.cmpi eq, %arg1, %c0_i32 : i32
    %1 = arith.extui %0 : i1 to i32
    %c0_i32_0 = arith.constant 0 : i32
    %2 = arith.cmpi ne, %1, %c0_i32_0 : i32
    scf.if %2 {
      %cst_21 = arith.constant 0.000000e+00 : f32
      %47 = vector.broadcast %cst_21 : f32 to vector<8x512xf32>
      %c0_22 = arith.constant 0 : index
      %c0_23 = arith.constant 0 : index
      %48 = vector.load %arg5[%c0_22, %c0_23] : memref<8x512xf32, #tpu.memory_space<vmem>>, vector<8x512xf32>
      tpu.vector_store %arg5[%c0_22, %c0_23], %47 {strides = array<i32>} : memref<8x512xf32, #tpu.memory_space<vmem>>, vector<8x512xf32>,
      %cst_24 = arith.constant 0.000000e+00 : f32
      %49 = vector.broadcast %cst_24 : f32 to vector<8x512xf32>
      %c0_25 = arith.constant 0 : index
      %c0_26 = arith.constant 0 : index
      %50 = vector.load %arg6[%c0_25, %c0_26] : memref<8x512xf32, #tpu.memory_space<vmem>>, vector<8x512xf32>
      tpu.vector_store %arg6[%c0_25, %c0_26], %49 {strides = array<i32>} : memref<8x512xf32, #tpu.memory_space<vmem>>, vector<8x512xf32>,
    } else {
    }
    %c0 = arith.constant 0 : index
    %c0_1 = arith.constant 0 : index
    %3 = vector.load %arg2[%c0, %c0_1] : memref<8x512xf32, #tpu.memory_space<vmem>>, vector<8x512xf32>
    %c0_2 = arith.constant 0 : index
    %c0_3 = arith.constant 0 : index
    %4 = vector.load %arg3[%c0_2, %c0_3] : memref<8x512xf32, #tpu.memory_space<vmem>>, vector<8x512xf32>
    %c1_i32 = arith.constant 1 : i32
    %5 = arith.muli %arg0, %c1_i32 : i32
    %6 = arith.addi %5, %arg1 : i32
    %c8_i32 = arith.constant 8 : i32
    %7 = arith.muli %6, %c8_i32 : i32
    %8 = tpu.iota {dimensions = array<i32: 0>} : vector<8x512xi32>
    %9 = vector.broadcast %7 : i32 to vector<8x512xi32>
    %10 = arith.addi %9, %8 : vector<8x512xi32>
    %c1_i32_4 = arith.constant 1 : i32
    %11 = vector.broadcast %c1_i32_4 : i32 to vector<8x512xi32>
    %12 = arith.cmpi slt, %10, %11 : vector<8x512xi32>
    %cst = arith.constant 0.000000e+00 : f32
    %13 = vector.broadcast %cst : f32 to vector<8x512xf32>
    %14 = arith.select %12, %3, %13 : vector<8x512xi1>, vector<8x512xf32>
    %cst_5 = arith.constant 0.000000e+00 : f32
    %15 = vector.broadcast %cst_5 : f32 to vector<8x512xf32>
    %16 = arith.select %12, %4, %15 : vector<8x512xi1>, vector<8x512xf32>
    %cst_6 = arith.constant 1.000000e+00 : f32
    %17 = vector.broadcast %cst_6 : f32 to vector<8x512xf32>
    %18 = arith.cmpf oeq, %16, %17 : vector<8x512xf32>
    %cst_7 = arith.constant 1.000000e+00 : f32
    %19 = vector.broadcast %cst_7 : f32 to vector<8x512xf32>
    %20 = arith.subf %19, %14 : vector<8x512xf32>
    %cst_8 = arith.constant 1.000000e+00 : f32
    %21 = vector.broadcast %cst_8 : f32 to vector<8x512xf32>
    %22 = arith.subf %21, %16 : vector<8x512xf32>
    %23 = arith.mulf %22, %22 : vector<8x512xf32>
    %24 = arith.mulf %23, %23 : vector<8x512xf32>
    %25 = arith.select %18, %14, %20 : vector<8x512xi1>, vector<8x512xf32>
    %26 = arith.mulf %20, %20 : vector<8x512xf32>
    %27 = arith.mulf %14, %14 : vector<8x512xf32>
    %28 = arith.mulf %27, %24 : vector<8x512xf32>
    %29 = arith.select %18, %26, %28 : vector<8x512xi1>, vector<8x512xf32>
    %30 = math.log %25 : vector<8x512xf32>
    %31 = arith.mulf %30, %29 : vector<8x512xf32>
    %c0_9 = arith.constant 0 : index
    %c0_10 = arith.constant 0 : index
    %32 = vector.load %arg5[%c0_9, %c0_10] : memref<8x512xf32, #tpu.memory_space<vmem>>, vector<8x512xf32>
    %33 = vector.shape_cast %31 : vector<8x512xf32> to vector<1x8x512xf32>
    %cst_11 = arith.constant dense<0.000000e+00> : vector<8x512xf32>
    %34 = vector.multi_reduction <add>, %33, %cst_11 [0] : vector<1x8x512xf32> to vector<8x512xf32>
    %35 = arith.addf %32, %34 : vector<8x512xf32>
    %c0_12 = arith.constant 0 : index
    %c0_13 = arith.constant 0 : index
    %36 = vector.load %arg5[%c0_12, %c0_13] : memref<8x512xf32, #tpu.memory_space<vmem>>, vector<8x512xf32>
    tpu.vector_store %arg5[%c0_12, %c0_13], %35 {strides = array<i32>} : memref<8x512xf32, #tpu.memory_space<vmem>>, vector<8x512xf32>,
    %c0_14 = arith.constant 0 : index
    %c0_15 = arith.constant 0 : index
    %37 = vector.load %arg6[%c0_14, %c0_15] : memref<8x512xf32, #tpu.memory_space<vmem>>, vector<8x512xf32>
    %38 = arith.extui %18 : vector<8x512xi1> to vector<8x512xi32>
    %39 = arith.sitofp %38 : vector<8x512xi32> to vector<8x512xf32>
    %40 = vector.shape_cast %39 : vector<8x512xf32> to vector<1x8x512xf32>
    %cst_16 = arith.constant dense<0.000000e+00> : vector<8x512xf32>
    %41 = vector.multi_reduction <add>, %40, %cst_16 [0] : vector<1x8x512xf32> to vector<8x512xf32>
    %42 = arith.addf %37, %41 : vector<8x512xf32>
    %c0_17 = arith.constant 0 : index
    %c0_18 = arith.constant 0 : index
    %43 = vector.load %arg6[%c0_17, %c0_18] : memref<8x512xf32, #tpu.memory_space<vmem>>, vector<8x512xf32>
    tpu.vector_store %arg6[%c0_17, %c0_18], %42 {strides = array<i32>} : memref<8x512xf32, #tpu.memory_space<vmem>>, vector<8x512xf32>,
    %c0_i32_19 = arith.constant 0 : i32
    %44 = arith.cmpi eq, %arg1, %c0_i32_19 : i32
    %45 = arith.extui %44 : i1 to i32
    %c0_i32_20 = arith.constant 0 : i32
    %46 = arith.cmpi ne, %45, %c0_i32_20 : i32
    scf.if %46 {
      %c0_21 = arith.constant 0 : index
      %c0_22 = arith.constant 0 : index
      %47 = vector.load %arg5[%c0_21, %c0_22] : memref<8x512xf32, #tpu.memory_space<vmem>>, vector<8x512xf32>
      %48 = vector.shape_cast %47 : vector<8x512xf32> to vector<1x8x512xf32>
      %cst_23 = arith.constant dense<0.000000e+00> : vector<1xf32>
      %49 = vector.multi_reduction <add>, %48, %cst_23 [1, 2] : vector<1x8x512xf32> to vector<1xf32>
      %50 = vector.shape_cast %49 : vector<1xf32> to vector<1x1x1xf32>
      %51 = vector.extract %50[0, 0, 0] : f32 from vector<1x1x1xf32>
      %c0_24 = arith.constant 0 : index
      %c0_25 = arith.constant 0 : index
      %52 = memref.load %arg4[%c0_24, %c0_25] : memref<1x2xf32, #tpu.memory_space<smem>>
      memref.store %51, %arg4[%c0_24, %c0_25] : memref<1x2xf32, #tpu.memory_space<smem>>
      %c0_26 = arith.constant 0 : index
      %c0_27 = arith.constant 0 : index
      %53 = vector.load %arg6[%c0_26, %c0_27] : memref<8x512xf32, #tpu.memory_space<vmem>>, vector<8x512xf32>
      %54 = vector.shape_cast %53 : vector<8x512xf32> to vector<1x8x512xf32>
      %cst_28 = arith.constant dense<0.000000e+00> : vector<1xf32>
      %55 = vector.multi_reduction <add>, %54, %cst_28 [1, 2] : vector<1x8x512xf32> to vector<1xf32>
      %56 = vector.shape_cast %55 : vector<1xf32> to vector<1x1x1xf32>
      %57 = vector.extract %56[0, 0, 0] : f32 from vector<1x1x1xf32>
      %c0_29 = arith.constant 0 : index
      %c1 = arith.constant 1 : index
      %58 = memref.load %arg4[%c0_29, %c1] : memref<1x2xf32, #tpu.memory_space<smem>>
      memref.store %57, %arg4[%c0_29, %c1] : memref<1x2xf32, #tpu.memory_space<smem>>
    } else {
    }
    return
  }
  func.func @transform_0(%arg0: i32, %arg1: i32) -> (i32, i32) {
    %c1_i32 = arith.constant 1 : i32
    %0 = arith.muli %arg0, %c1_i32 : i32
    %1 = arith.addi %0, %arg1 : i32
    %c0_i32 = arith.constant 0 : i32
    %2 = arith.minsi %1, %c0_i32 : i32
    %c0_i32_0 = arith.constant 0 : i32
    %c0_i32_1 = arith.constant 0 : i32
    return %2, %c0_i32_0 : i32, i32
  }
  func.func @transform_1(%arg0: i32, %arg1: i32) -> (i32, i32) {
    %c1_i32 = arith.constant 1 : i32
    %0 = arith.muli %arg0, %c1_i32 : i32
    %1 = arith.addi %0, %arg1 : i32
    %c0_i32 = arith.constant 0 : i32
    %2 = arith.minsi %1, %c0_i32 : i32
    %c0_i32_0 = arith.constant 0 : i32
    %c0_i32_1 = arith.constant 0 : i32
    return %2, %c0_i32_0 : i32, i32
  }
  func.func @transform_2(%arg0: i32, %arg1: i32) -> (i32, i32) {
    %c0_i32 = arith.constant 0 : i32
    %c0_i32_0 = arith.constant 0 : i32
    return %arg0, %c0_i32 : i32, i32
  }
}

</mosaic_0001>

<bundles_post_ra>
// kernel: tpu_custom_call.1
= control target key start
LH: loop header
LB: loop body
LE: loop exit
PB: predicated region body
PF: predicated region fallthrough
CT: control target
= control target key end

     0   :  { %7 = vsyncpa [#allocation5], 0  ;;  %s615_s0 = inlined_call_operand.hbm [shape: f32[1,512], index: 0, kind: input, shape index: {}]   ;;  %s616_s1 = inlined_call_operand.hbm [shape: f32[1,512], index: 1, kind: input, shape index: {}]   ;;  %s617_s2 = inlined_call_operand.hbm [shape: f32[1,2], index: 2, kind: output, shape index: {}]  }
   0x1   :  { %8 = vsyncpa [#allocation8], 0 }
   0x2   :  { %9 = vsyncpa [#allocation6], 0 }
   0x3   :  { %21 = vsyncadd [#allocation5], 448  ;;  %s530_s9 = smov [#allocation4]   ;;  %s470_s13 = scalar_lea.hbm %s615_s0, 64 }
   0x4   :  { %s27_s10 = sshll.u32 %s530_s9, 4  ;;  %p471_p0 = scmp.ne.s32.totalorder %s615_s0, %s470_s13  ;;  %s28_s10 = int_to_ptr.vmem [resolvable:$true] %s27_s10 }
   0x5   :  { %p474_p1 = scmp.lt.u32.totalorder %s470_s13, %s615_s0 }
   0x7   :  { %p476_p2 = pnand %p474_p1, %p471_p0 }
   0x9   :  { %479 = shalt.err (!%p476_p2)
}
   0xa   :  { %s480_s18 = scalar_lea.vmem %s28_s10, 64  ;;  %s484_s19 = scalar_lea.vmem %s28_s10, 512 }
   0xb   :  { %p481_p3 = scmp.ne.s32.totalorder %s28_s10, %s480_s18  ;;  %p485_p4 = scmp.lt.s32.totalorder %s28_s10, %s28_s10 }
   0xc   :  { %p486_p5 = scmp.lt.s32.totalorder %s484_s19, %s480_s18 }
   0xe   :  { %p487_p6 = por %p486_p5, %p485_p4 }
  0x10   :  { %p488_p7 = pnand %p487_p6, %p481_p3 }
  0x12   :  { %491 = shalt.err (!%p488_p7)
}
  0x13   :  { %s531_s20 = smov 64   ;;  %s532_s21 = smov 4  }
  0x14   :  { %33 = dma.hbm_to_vmem [thread:$0]  %s615_s0, 64, %s28_s10, [#allocation5], %s531_s20, %s531_s20, %s532_s21  }
  0x15   :  { %45 = vsyncadd [#allocation8], 448  ;;  %s533_s24 = smov [#allocation7]   ;;  %s492_s28 = scalar_lea.hbm %s616_s1, 64 }
  0x16   :  { %s51_s25 = sshll.u32 %s533_s24, 4  ;;  %p493_p8 = scmp.ne.s32.totalorder %s616_s1, %s492_s28  ;;  %s52_s25 = int_to_ptr.vmem [resolvable:$true] %s51_s25 }
  0x17   :  { %p496_p9 = scmp.lt.u32.totalorder %s492_s28, %s616_s1 }
  0x19   :  { %p498_p10 = pnand %p496_p9, %p493_p8 }
  0x1b   :  { %501 = shalt.err (!%p498_p10)
}
  0x1c   :  { %s502_s5 = scalar_lea.vmem %s52_s25, 64  ;;  %s506_s0 = scalar_lea.vmem %s52_s25, 512 }
  0x1d   :  { %p503_p11 = scmp.ne.s32.totalorder %s52_s25, %s502_s5  ;;  %p507_p12 = scmp.lt.s32.totalorder %s52_s25, %s52_s25 }
  0x1e   :  { %p508_p13 = scmp.lt.s32.totalorder %s506_s0, %s502_s5 }
  0x20   :  { %p509_p0 = por %p508_p13, %p507_p12 }
  0x22   :  { %p510_p1 = pnand %p509_p0, %p503_p11 }
  0x24   :  { %513 = shalt.err (!%p510_p1)
}
  0x25   :  { %57 = dma.hbm_to_vmem [thread:$0]  %s616_s1, 64, %s52_s25, [#allocation8], %s531_s20, %s531_s20, %s532_s21  }
  0x26   :  { %524 = dma.done.wait [#allocation5], 512  }
  0x27   :  { %525 = vsyncadd [#allocation5], 4294966784 }
  0x28   :  { %526 = dma.done.wait [#allocation8], 512  }
  0x29   :  { %527 = vsyncadd [#allocation8], 4294966784  ;;  %v108_v0 = vlaneseq  ;;  %v534_v1 = vmov 1966171168   ;;  %s514_s11 = scalar_lea.hbm %s617_s2, 16 }
  0x2a   :  { %v126_v2 = vunpack.c.l.s4 %v534_v1  ;;  %v462_v6 = vld.sshfl [vmem:[#allocation4] sm:$0xff pattern:$0x75316420]  ;;  %v463_v7 = vld.sshfl [vmem:[#allocation4 + $0x8] sm:$0xff pattern:$0x75316420]  ;;  %p515_p2 = scmp.ne.s32.totalorder %s617_s2, %s514_s11  ;;  %p518_p3 = scmp.lt.u32.totalorder %s514_s11, %s617_s2 }
  0x2b   :  { %v109_v3 = vshrl.u32 %v108_v0, 7  ;;  %v464_v8 = vld.sshfl [vmem:[#allocation4 + $0x10] sm:$0xff pattern:$0x75316420]  ;;  %v153_v14 = vcombine.low %v462_v6, %v463_v7  ;;  %v154_v15 = vcombine.high %v462_v6, %v463_v7 }
  0x2c   :  { %v127_v4 = vunpack.c.0.s8 %v126_v2  ;;  %v465_v9 = vld.sshfl [vmem:[#allocation4 + $0x18] sm:$0xff pattern:$0x75316420]  ;;  %v466_v10 = vld.sshfl [vmem:[#allocation7] sm:$0xff pattern:$0x75316420]  ;;  %p520_p4 = pnand %p518_p3, %p515_p2 }
  0x2d   :  { %v467_v11 = vld.sshfl [vmem:[#allocation7 + $0x8] sm:$0xff pattern:$0x75316420]  ;;  %v468_v12 = vld.sshfl [vmem:[#allocation7 + $0x10] sm:$0xff pattern:$0x75316420]  ;;  %v155_v16 = vcombine.low %v464_v8, %v465_v9  ;;  %v156_v17 = vcombine.high %v464_v8, %v465_v9 }
  0x2e   :  { %v130_v5 = vsub.s32 %v127_v4, %v109_v3  ;;  %v469_v13 = vld.sshfl [vmem:[#allocation7 + $0x18] sm:$0xff pattern:$0x75316420]  ;;  %v237_v20 = vcombine.low %v466_v10, %v467_v11  ;;  %v238_v21 = vcombine.high %v466_v10, %v467_v11  ;;  %vm112_vm0 = vcmp.lt.s32.totalorder %v109_v3, 1 }
  0x2f   :  { %v239_v24 = vcombine.low %v468_v12, %v469_v13  ;;  %v240_v25 = vcombine.high %v468_v12, %v469_v13 }
  0x30   :  { %v163_v18 = vrot.slane %v153_v14, %v130_v5  ;;  %v170_v19 = vrot.slane %v154_v15, %v130_v5  ;;  %v177_v22 = vrot.slane %v155_v16, %v130_v5  ;;  %v184_v23 = vrot.slane %v156_v17, %v130_v5 }
  0x31   :  { %v247_v26 = vrot.slane %v237_v20, %v130_v5  ;;  %v254_v27 = vrot.slane %v238_v21, %v130_v5  ;;  %v261_v30 = vrot.slane %v239_v24, %v130_v5  ;;  %v268_v31 = vrot.slane %v240_v25, %v130_v5 }
  0x32   :  { %v185_v28 = vcombine.low %v163_v18, %v177_v22  ;;  %v187_v29 = vcombine.low %v170_v19, %v184_v23  ;;  %v186_v32 = vcombine.high %v163_v18, %v177_v22  ;;  %v188_v33 = vcombine.high %v170_v19, %v184_v23 }
  0x33   :  { %v269_v35 = vcombine.low %v247_v26, %v261_v30  ;;  %v271_v36 = vcombine.low %v254_v27, %v268_v31  ;;  %v270_v37 = vcombine.high %v247_v26, %v261_v30  ;;  %v272_v38 = vcombine.high %v254_v27, %v268_v31 }
  0x34   :  { %v193_v34 = vsel %vm112_vm0, %v185_v28, 0.0  ;;  %v194_v39 = vsel %vm112_vm0, %v187_v29, 0.0  ;;  %v195_v43 = vsel %vm112_vm0, %v186_v32, 0.0  ;;  %v196_v44 = vsel %vm112_vm0, %v188_v33, 0.0 }
  0x35   :  { %v277_v40 = vsel %vm112_vm0, %v269_v35, 0.0  ;;  %v278_v41 = vsel %vm112_vm0, %v271_v36, 0.0  ;;  %v285_v42 = vsub.f32 1.0, %v193_v34  ;;  %v279_v46 = vsel %vm112_vm0, %v270_v37, 0.0 }
  0x36   :  { %vm281_vm1 = vcmp.eq.f32.partialorder %v277_v40, 1.0  ;;  %v289_v45 = vsub.f32 1.0, %v277_v40  ;;  %v584_v47 = vsel %vm112_vm0, %v272_v38, 0.0  ;;  %v286_v48 = vsub.f32 1.0, %v194_v39 }
  0x37   :  { %vm282_vm2 = vcmp.eq.f32.partialorder %v278_v41, 1.0  ;;  %v290_v49 = vsub.f32 1.0, %v278_v41  ;;  %v287_v50 = vsub.f32 1.0, %v195_v43  ;;  %v288_v51 = vsub.f32 1.0, %v196_v44 }
  0x38   :  { %v301_v52 = vsel %vm281_vm1, %v193_v34, %v285_v42  ;;  %vm283_vm3 = vcmp.eq.f32.partialorder %v279_v46, 1.0  ;;  %vm284_vm4 = vcmp.eq.f32.partialorder %v584_v47, 1.0  ;;  %v291_v53 = vsub.f32 1.0, %v279_v46 }
  0x39   :  { %v293_v54 = vmul.f32 %v289_v45, %v289_v45  ;;  %v292_v55 = vsub.f32 1.0, %v584_v47  ;;  %v302_v56 = vsel %vm282_vm2, %v194_v39, %v286_v48  ;;  %v294_v57 = vmul.f32 %v290_v49, %v290_v49 }
  0x3a   :  { %454 = vlog2.f32 %v301_v52  ;;  %v303_v58 = vsel %vm283_vm3, %v195_v43, %v287_v50  ;;  %v304_v59 = vsel %vm284_vm4, %v196_v44, %v288_v51  ;;  %v295_v60 = vmul.f32 %v291_v53, %v291_v53 }
  0x3b   :  { %v297_v61 = vmul.f32 %v293_v54, %v293_v54  ;;  %v309_v62 = vmul.f32 %v193_v34, %v193_v34  ;;  %456 = vlog2.f32 %v302_v56  ;;  %v296_v63 = vmul.f32 %v292_v55, %v292_v55 }
  0x3c   :  { %v298_v0 = vmul.f32 %v294_v57, %v294_v57  ;;  %v310_v1 = vmul.f32 %v194_v39, %v194_v39  ;;  %458 = vlog2.f32 %v303_v58  ;;  %v299_v2 = vmul.f32 %v295_v60, %v295_v60 }
  0x3d   :  { %460 = vlog2.f32 %v304_v59  ;;  %v305_v3 = vmul.f32 %v285_v42, %v285_v42  ;;  %v311_v4 = vmul.f32 %v195_v43, %v195_v43  ;;  %v313_v5 = vmul.f32 %v309_v62, %v297_v61 }
  0x3e   :  { %v300_v6 = vmul.f32 %v296_v63, %v296_v63  ;;  %v312_v7 = vmul.f32 %v196_v44, %v196_v44  ;;  %v306_v8 = vmul.f32 %v286_v48, %v286_v48  ;;  %v314_v9 = vmul.f32 %v310_v1, %v298_v0 }
  0x3f   :  { %v307_v11 = vmul.f32 %v287_v50, %v287_v50  ;;  %v315_v12 = vmul.f32 %v311_v4, %v299_v2  ;;  %v317_v13 = vsel %vm281_vm1, %v305_v3, %v313_v5  ;;  %v308_v14 = vmul.f32 %v288_v51, %v288_v51 }
  0x40   :  { %v316_v15 = vmul.f32 %v312_v7, %v300_v6  ;;  %v318_v18 = vsel %vm282_vm2, %v306_v8, %v314_v9  ;;  %v535_v19 = vmov 0.0  }
  0x41   :  { %v431_v20 = vsel %vm281_vm1, 1.0, %v535_v19  ;;  %v432_v21 = vsel %vm282_vm2, 1.0, %v535_v19  ;;  %v319_v25 = vsel %vm283_vm3, %v307_v11, %v315_v12  ;;  %v433_v32 = vsel %vm283_vm3, 1.0, %v535_v19 }
  0x42   :  { %v320_v27 = vsel %vm284_vm4, %v308_v14, %v316_v15  ;;  %v398_v30 = vadd.f32 %v432_v21, %v431_v20  ;;  %v434_v38 = vsel %vm284_vm4, 1.0, %v535_v19 }
  0x44   :  { %v455_v10 = vpop.eup %454  ;;  %v399_v37 = vadd.f32 %v433_v32, %v398_v30 }
  0x45   :  { %v322_v16 = vmul.f32 0.6931472, %v455_v10  ;;  %v457_v17 = vpop.eup %456 }
  0x46   :  { %v324_v22 = vmul.f32 0.6931472, %v457_v17  ;;  %v459_v24 = vpop.eup %458  ;;  %v400_v40 = vadd.f32 %v434_v38, %v399_v37 }
  0x47   :  { %v329_v23 = vmul.f32 %v322_v16, %v317_v13  ;;  %v461_v26 = vpop.eup %460  ;;  %v326_v28 = vmul.f32 0.6931472, %v459_v24 }
  0x48   :  { %v330_v29 = vmul.f32 %v324_v22, %v318_v18  ;;  %v328_v31 = vmul.f32 0.6931472, %v461_v26 }
  0x49   :  { %v331_v33 = vmul.f32 %v326_v28, %v319_v25 }
  0x4a   :  { %v380_v34 = vadd.f32 %v330_v29, %v329_v23  ;;  %v332_v35 = vmul.f32 %v328_v31, %v320_v27 }
  0x4c   :  { %v381_v36 = vadd.f32 %v380_v34, %v331_v33 }
  0x4e   :  { %v382_v39 = vadd.f32 %v381_v36, %v332_v35 }
  0x50   :  { %383 = vadd.xlane.f32.xlu0 %v382_v39 }
  0x54   :  { %401 = vadd.xlane.f32.xlu0 %v400_v40 }
  0xdd   :  { %v384_v41 = vpop.xlane.xlu0 %383 }
  0xde   :  { %v385_v42 = vrot.slane %v384_v41, 4 }
  0xe0   :  { %v386_v43 = vadd.f32 %v385_v42, %v384_v41 }
  0xe1   :  { %v402_v44 = vpop.xlane.xlu0 %401 }
  0xe2   :  { %v387_v45 = vrot.slane %v386_v43, 2  ;;  %v403_v48 = vrot.slane %v402_v44, 4 }
  0xe4   :  { %v404_v46 = vadd.f32 %v403_v48, %v402_v44  ;;  %v388_v49 = vadd.f32 %v387_v45, %v386_v43 }
  0xe6   :  { %v405_v50 = vrot.slane %v404_v46, 2  ;;  %v389_v51 = vrot.slane %v388_v49, 1 }
  0xe8   :  { %v406_v52 = vadd.f32 %v405_v50, %v404_v46  ;;  %v390_v53 = vadd.f32 %v389_v51, %v388_v49 }
  0xea   :  { %435 = vpush %v390_v53  ;;  %v407_v54 = vrot.slane %v406_v52, 1 }
  0xec   :  { %v408_v47 = vadd.f32 %v407_v54, %v406_v52 }
  0xee   :  { %437 = vpush %v408_v47 }
 0x11b   :  { %s436_s1 = spop %435 }
 0x11c   :  { %393 = sst [smem:[#allocation9]] %s436_s1 }
 0x11f   :  { %s438_s8 = spop %437 }
 0x120   :  { %411 = sst [smem:[#allocation9 + $0x1]] %s438_s8 }
 0x121   :  { %523 = shalt.err (!%p520_p4)
}
 0x122   :  { %s536_s16 = smov [#allocation9]  }
 0x123   :  { %419 = dma.smem_to_hbm %s536_s16, 16, %s617_s2, [#allocation6]  }
 0x124   :  { %528 = dma.done.wait [#allocation6], 16  }
 0x125   :  { %529 = vsyncadd [#allocation6], 4294967280 }
 0x126   :  { %423 = sfence }
 0x127   :  { %424 = vsyncpa [#allocation5], 1 }
 0x128   :  { %425 = vsyncpa [#allocation8], 1 }
 0x129   :  { %426 = vsyncpa [#allocation6], 1 }

</bundles_post_ra>
